<compile_context>
chip_gen: v6e
topology: v6e:2x2x1
jax: 0.10.0
libtpu: 0.0.40
codegen_flags: <defaults>
</compile_context>

<pallas_src>
import functools

import jax
import jax.numpy as jnp
from jax.experimental import pallas as pl
from jax.experimental.pallas import tpu as pltpu


def basic_block_kernel(x_ref, m1_ref, b1_ref, m2_ref, b2_ref, o_ref, *, H):
    """One batch-group of whole images per grid step.

    x_ref  : (R, W*Cin)   f32   R = images_per_step * H, lane-dense (lane = w*Cin+ci)
    m1_ref : (3, W*Cin, W*Cmid)  bf16  per-dh banded conv1 weights, BN1 scale folded
    b1_ref : (1, W*Cmid)  f32          BN1 bias (tiled over w)
    m2_ref : (3, W*Cmid, W*Cout) bf16  per-dh banded conv2 weights, BN2 scale folded
    b2_ref : (1, W*Cout)  f32
    o_ref  : (R, W*Cout)  f32
    """
    x = x_ref[...]                                            # (R, WCi) f32
    R = x.shape[0]
    h = jax.lax.broadcasted_iota(jnp.int32, (R, 1), 0) % H    # row within its image
    not_top = h >= 1
    not_bot = h <= H - 2

    def shifted(v):
        # v[r-1] / v[r+1] with zeros where the neighbour row lies outside the
        # image (conv zero-padding in H, and separation between stacked images).
        up = jnp.where(not_top, pltpu.roll(v, shift=1, axis=0), 0.0)
        dn = jnp.where(not_bot, pltpu.roll(v, shift=R - 1, axis=0), 0.0)
        return up.astype(jnp.bfloat16), dn.astype(jnp.bfloat16)

    # ---- conv1 (+ folded BN1 scale): three accumulating MXU matmuls, fp32 acc ----
    x_up, x_dn = shifted(x)
    y1 = jnp.dot(x_up, m1_ref[0], preferred_element_type=jnp.float32)
    y1 += jnp.dot(x.astype(jnp.bfloat16), m1_ref[1], preferred_element_type=jnp.float32)
    y1 += jnp.dot(x_dn, m1_ref[2], preferred_element_type=jnp.float32)
    y1 = jnp.maximum(y1 + b1_ref[...], 0.0)                   # BN1 bias + ReLU

    # ---- conv2 (+ folded BN2 scale) ----
    y1_up, y1_dn = shifted(y1)
    y2 = jnp.dot(y1_up, m2_ref[0], preferred_element_type=jnp.float32)
    y2 += jnp.dot(y1.astype(jnp.bfloat16), m2_ref[1], preferred_element_type=jnp.float32)
    y2 += jnp.dot(y1_dn, m2_ref[2], preferred_element_type=jnp.float32)
    y2 = y2 + b2_ref[...]                                     # BN2 bias

    # ---- identity residual (exact fp32) + ReLU, lane-dense unmasked store ----
    o_ref[...] = jnp.maximum(y2 + x, 0.0).astype(o_ref.dtype)


def _banded_tap_matrices(w_hwio, scale, W):
    """(3,3,Cin,Cout) HWIO conv weight -> (3, W*Cin, W*Cout) bf16.

    Tap dh gives B[dh] such that conv_out_row[h] = sum_dh x_row[h+dh-1] @ B[dh],
    where x_row is the image row flattened lane-dense (lane = w*Cin + ci).  The
    eye(W, k=1-dw) kron placement folds the three dw taps and the width
    zero-padding into the band; the per-output-channel BN scale is folded into
    the columns so the kernel epilogue is bias-add only.
    """
    Cout = w_hwio.shape[-1]
    w = w_hwio.astype(jnp.float32) * scale.astype(jnp.float32).reshape(1, 1, 1, Cout)
    taps = []
    for dh in range(3):
        m = None
        for dw in range(3):
            t = jnp.kron(jnp.eye(W, k=1 - dw, dtype=jnp.float32), w[dh, dw])
            m = t if m is None else m + t
        taps.append(m)
    return jnp.stack(taps, axis=0).astype(jnp.bfloat16)


def prepare_block_params(w1, s1, b1, w2, s2, b2, *, W):
    """One-time weight prep (outside the per-call jit): banded bf16 weights with
    BN scales folded in, and lane-tiled fp32 biases."""
    Cmid, Cout = w1.shape[-1], w2.shape[-1]
    m1 = _banded_tap_matrices(w1, s1, W)                      # (3, W*Cin,  W*Cmid)
    m2 = _banded_tap_matrices(w2, s2, W)                      # (3, W*Cmid, W*Cout)
    b1f = jnp.tile(b1.astype(jnp.float32), W).reshape(1, W * Cmid)
    b2f = jnp.tile(b2.astype(jnp.float32), W).reshape(1, W * Cout)
    return m1, b1f, m2, b2f


@jax.jit
def basic_block_forward(x_nchw, m1, b1f, m2, b2f):
    """x_nchw: (N, C, H, W) float32 (PyTorch layout). Returns NCHW float32."""
    N, Cin, H, W = x_nchw.shape
    WCi = W * Cin
    WCm = m1.shape[-1]
    WCo = m2.shape[-1]
    Cout = WCo // W
    assert m1.shape == (3, WCi, WCm) and m2.shape == (3, WCm, WCo)
    assert Cin == Cout, "downsample=None requires inplanes == planes"

    NH = N * H
    # Lane-dense rows: (N*H, W*C). No padding; H-padding handled in-kernel.
    x_rows = jnp.transpose(x_nchw, (0, 2, 3, 1)).reshape(NH, WCi)

    # Images per grid step: fold batch into the MXU M dim (aim ~256 rows/step),
    # keeping blocks aligned to whole images so the in-kernel row masks handle
    # all H-boundaries (no halo DMA, no cross-image mixing).
    cap = max(1, 256 // H)
    NB = 1
    for d in range(1, N + 1):
        if N % d == 0 and d <= cap:
            NB = d
    if (NB * H) % 8 != 0:
        NB = N                         # full-extent block exempt from 8-sublane rule
    R = NB * H
    G = N // NB

    flops = 2 * NH * 3 * WCi * WCm + 2 * NH * 3 * WCm * WCo
    bytes_accessed = (NH * WCi * 4 + m1.size * 2 + m2.size * 2
                      + b1f.size * 4 + b2f.size * 4 + NH * WCo * 4)

    out_rows = pl.pallas_call(
        functools.partial(basic_block_kernel, H=H),
        out_shape=jax.ShapeDtypeStruct((NH, WCo), jnp.float32),
        grid=(G,),
        in_specs=[
            # Activations: one batch-group per step (TCs shard distinct images).
            pl.BlockSpec((R, WCi), lambda g: (g, 0)),
            # Weights / biases: constant index maps -> fetched once, stay resident.
            pl.BlockSpec((3, WCi, WCm), lambda g: (0, 0, 0)),
            pl.BlockSpec((1, WCm), lambda g: (0, 0)),
            pl.BlockSpec((3, WCm, WCo), lambda g: (0, 0, 0)),
            pl.BlockSpec((1, WCo), lambda g: (0, 0)),
        ],
        out_specs=pl.BlockSpec((R, WCo), lambda g: (g, 0)),
        compiler_params=pltpu.CompilerParams(dimension_semantics=("parallel",)),
        cost_estimate=pl.CostEstimate(flops=flops, transcendentals=0,
                                      bytes_accessed=bytes_accessed),
    )(x_rows, m1, b1f, m2, b2f)

    return jnp.transpose(out_rows.reshape(N, H, W, Cout), (0, 3, 1, 2))


def reference_forward(x_nchw, w1, s1, b1, w2, s2, b2):
    """Plain-JAX reference with the same folded-BN (eval) semantics and the same
    bf16-operand / fp32-accumulate / fp32-residual precision as the kernel."""
    q = lambda a: a.astype(jnp.bfloat16).astype(jnp.float32)
    x = jnp.transpose(x_nchw, (0, 2, 3, 1))                   # NHWC f32
    w1f = q(w1 * s1.reshape(1, 1, 1, -1))
    w2f = q(w2 * s2.reshape(1, 1, 1, -1))
    dn = lambda a, w: jax.lax.conv_dimension_numbers(
        a.shape, w.shape, ('NHWC', 'HWIO', 'NHWC'))
    y = jax.lax.conv_general_dilated(q(x), w1f, (1, 1), 'SAME',
                                     dimension_numbers=dn(x, w1f))
    y = jnp.maximum(y + b1, 0.0)
    y = jax.lax.conv_general_dilated(q(y), w2f, (1, 1), 'SAME',
                                     dimension_numbers=dn(y, w2f))
    y = jnp.maximum(y + b2 + x, 0.0)                          # fp32 identity residual
    return jnp.transpose(y, (0, 3, 1, 2))


def make_params(key, inplanes, planes, eps=1e-5):
    ks = jax.random.split(key, 10)
    w1 = 0.1 * jax.random.normal(ks[0], (3, 3, inplanes, planes), jnp.float32)
    w2 = 0.1 * jax.random.normal(ks[1], (3, 3, planes, planes), jnp.float32)
    g1 = jax.random.uniform(ks[2], (planes,), minval=0.5, maxval=1.5)
    be1 = 0.1 * jax.random.normal(ks[3], (planes,))
    m1 = 0.1 * jax.random.normal(ks[4], (planes,))
    v1 = jax.random.uniform(ks[5], (planes,), minval=0.5, maxval=1.5)
    g2 = jax.random.uniform(ks[6], (planes,), minval=0.5, maxval=1.5)
    be2 = 0.1 * jax.random.normal(ks[7], (planes,))
    m2 = 0.1 * jax.random.normal(ks[8], (planes,))
    v2 = jax.random.uniform(ks[9], (planes,), minval=0.5, maxval=1.5)
    s1 = g1 / jnp.sqrt(v1 + eps)
    b1 = be1 - m1 * s1
    s2 = g2 / jnp.sqrt(v2 + eps)
    b2 = be2 - m2 * s2
    return w1, s1, b1, w2, s2, b2


if __name__ == "__main__":
    key = jax.random.PRNGKey(0)
    kx, kp = jax.random.split(key)

    N, C, H, W = 2, 8, 16, 16            # inplanes == planes (downsample=None); W*C = 128
    x = jax.random.normal(kx, (N, C, H, W), jnp.float32)
    w1, s1, b1, w2, s2, b2 = make_params(kp, C, C)

    # One-time weight preparation (BN scales folded, banded bf16 tap matrices).
    m1, b1f, m2, b2f = prepare_block_params(w1, s1, b1, w2, s2, b2, W=W)

    out = jax.block_until_ready(basic_block_forward(x, m1, b1f, m2, b2f))
    ref = reference_forward(x, w1, s1, b1, w2, s2, b2)

    assert out.shape == (N, C, H, W)
    assert jnp.allclose(out, ref, atol=1e-2, rtol=1e-2), "mismatch vs reference"

    print("KERNEL_OK")
</pallas_src>

<mosaic_0001>
module attributes {stable_mosaic.version = 11 : i64} {
  func.func @basic_block_kernel(%arg0: i32, %arg1: memref<32x128xf32, #tpu.memory_space<vmem>>, %arg2: memref<3x128x128xbf16, #tpu.memory_space<vmem>>, %arg3: memref<1x128xf32, #tpu.memory_space<vmem>>, %arg4: memref<3x128x128xbf16, #tpu.memory_space<vmem>>, %arg5: memref<1x128xf32, #tpu.memory_space<vmem>>, %arg6: memref<32x128xf32, #tpu.memory_space<vmem>>) attributes {dimension_semantics = [#tpu.dimension_semantics<parallel>], iteration_bounds = array<i64: 1>, scalar_prefetch = 0 : i64, scratch_operands = 0 : i64, tpu.core_type = #tpu.core_type<tc>, window_params = [{transform_indices = @transform_0, window_bounds = array<i64: 32, 128>}, {pipeline_mode = #tpu.pipeline_mode<synchronous>, transform_indices = @transform_1, window_bounds = array<i64: 3, 128, 128>}, {pipeline_mode = #tpu.pipeline_mode<synchronous>, transform_indices = @transform_2, window_bounds = array<i64: 1, 128>}, {pipeline_mode = #tpu.pipeline_mode<synchronous>, transform_indices = @transform_3, window_bounds = array<i64: 3, 128, 128>}, {pipeline_mode = #tpu.pipeline_mode<synchronous>, transform_indices = @transform_4, window_bounds = array<i64: 1, 128>}, {transform_indices = @transform_5, window_bounds = array<i64: 32, 128>}]} {
    %c0 = arith.constant 0 : index
    %c0_0 = arith.constant 0 : index
    %0 = vector.load %arg1[%c0, %c0_0] : memref<32x128xf32, #tpu.memory_space<vmem>>, vector<32x128xf32>
    %1 = tpu.iota {dimensions = array<i32: 0>} : vector<32x1xi32>
    %c16_i32 = arith.constant 16 : i32
    %c0_i32 = arith.constant 0 : i32
    %2 = arith.cmpi eq, %c16_i32, %c0_i32 : i32
    %c1_i32 = arith.constant 1 : i32
    %3 = arith.select %2, %c1_i32, %c16_i32 : i32
    %4 = vector.broadcast %3 : i32 to vector<32x1xi32>
    %5 = arith.remsi %1, %4 : vector<32x1xi32>
    %c0_i32_1 = arith.constant 0 : i32
    %6 = vector.broadcast %c0_i32_1 : i32 to vector<32x1xi32>
    %7 = arith.cmpi ne, %5, %6 : vector<32x1xi32>
    %c0_i32_2 = arith.constant 0 : i32
    %8 = vector.broadcast %c0_i32_2 : i32 to vector<32x1xi32>
    %9 = arith.cmpi slt, %5, %8 : vector<32x1xi32>
    %c0_i32_3 = arith.constant 0 : i32
    %10 = arith.cmpi slt, %3, %c0_i32_3 : i32
    %11 = vector.broadcast %10 : i1 to vector<32x1xi1>
    %12 = vector.broadcast %11 : vector<32x1xi1> to vector<32x1xi1>
    %13 = arith.xori %9, %12 : vector<32x1xi1>
    %14 = arith.andi %13, %7 : vector<32x1xi1>
    %15 = vector.broadcast %3 : i32 to vector<32x1xi32>
    %16 = arith.addi %5, %15 : vector<32x1xi32>
    %17 = arith.select %14, %16, %5 : vector<32x1xi1>, vector<32x1xi32>
    %c1_i32_4 = arith.constant 1 : i32
    %18 = vector.broadcast %c1_i32_4 : i32 to vector<32x1xi32>
    %19 = arith.cmpi sge, %17, %18 : vector<32x1xi32>
    %c14_i32 = arith.constant 14 : i32
    %20 = vector.broadcast %c14_i32 : i32 to vector<32x1xi32>
    %21 = arith.cmpi sle, %17, %20 : vector<32x1xi32>
    %c1_i32_5 = arith.constant 1 : i32
    %22 = tpu.dynamic_rotate %0 by %c1_i32_5 dim 0 : vector<32x128xf32>, i32 -> vector<32x128xf32>
    %cst = arith.constant 0.000000e+00 : f32
    %23 = vector.shape_cast %19 : vector<32x1xi1> to vector<32x1xi1>
    %24 = vector.broadcast %23 : vector<32x1xi1> to vector<32x128xi1>
    %25 = vector.broadcast %cst : f32 to vector<32x128xf32>
    %26 = arith.select %24, %22, %25 : vector<32x128xi1>, vector<32x128xf32>
    %c31_i32 = arith.constant 31 : i32
    %27 = tpu.dynamic_rotate %0 by %c31_i32 dim 0 : vector<32x128xf32>, i32 -> vector<32x128xf32>
    %cst_6 = arith.constant 0.000000e+00 : f32
    %28 = vector.shape_cast %21 : vector<32x1xi1> to vector<32x1xi1>
    %29 = vector.broadcast %28 : vector<32x1xi1> to vector<32x128xi1>
    %30 = vector.broadcast %cst_6 : f32 to vector<32x128xf32>
    %31 = arith.select %29, %27, %30 : vector<32x128xi1>, vector<32x128xf32>
    %32 = arith.truncf %26 : vector<32x128xf32> to vector<32x128xbf16>
    %33 = arith.truncf %31 : vector<32x128xf32> to vector<32x128xbf16>
    %c0_7 = arith.constant 0 : index
    %c0_8 = arith.constant 0 : index
    %c0_9 = arith.constant 0 : index
    %34 = vector.load %arg2[%c0_7, %c0_8, %c0_9] : memref<3x128x128xbf16, #tpu.memory_space<vmem>>, vector<1x128x128xbf16>
    %35 = vector.shape_cast %34 : vector<1x128x128xbf16> to vector<128x128xbf16>
    %cst_10 = arith.constant dense<0.000000e+00> : vector<32x128xf32>
    %36 = tpu.matmul %32, %35, %cst_10 {dimension_numbers = #tpu.dot_dimension_numbers<[1], [0], [0], [1], [0, 0, 1, 1], [], []>} : vector<32x128xbf16>, vector<128x128xbf16>, vector<32x128xf32> -> vector<32x128xf32>
    %37 = arith.truncf %0 : vector<32x128xf32> to vector<32x128xbf16>
    %c1 = arith.constant 1 : index
    %c0_11 = arith.constant 0 : index
    %c0_12 = arith.constant 0 : index
    %38 = vector.load %arg2[%c1, %c0_11, %c0_12] : memref<3x128x128xbf16, #tpu.memory_space<vmem>>, vector<1x128x128xbf16>
    %39 = vector.shape_cast %38 : vector<1x128x128xbf16> to vector<128x128xbf16>
    %cst_13 = arith.constant dense<0.000000e+00> : vector<32x128xf32>
    %40 = tpu.matmul %37, %39, %cst_13 {dimension_numbers = #tpu.dot_dimension_numbers<[1], [0], [0], [1], [0, 0, 1, 1], [], []>} : vector<32x128xbf16>, vector<128x128xbf16>, vector<32x128xf32> -> vector<32x128xf32>
    %41 = arith.addf %36, %40 : vector<32x128xf32>
    %c2 = arith.constant 2 : index
    %c0_14 = arith.constant 0 : index
    %c0_15 = arith.constant 0 : index
    %42 = vector.load %arg2[%c2, %c0_14, %c0_15] : memref<3x128x128xbf16, #tpu.memory_space<vmem>>, vector<1x128x128xbf16>
    %43 = vector.shape_cast %42 : vector<1x128x128xbf16> to vector<128x128xbf16>
    %cst_16 = arith.constant dense<0.000000e+00> : vector<32x128xf32>
    %44 = tpu.matmul %33, %43, %cst_16 {dimension_numbers = #tpu.dot_dimension_numbers<[1], [0], [0], [1], [0, 0, 1, 1], [], []>} : vector<32x128xbf16>, vector<128x128xbf16>, vector<32x128xf32> -> vector<32x128xf32>
    %45 = arith.addf %41, %44 : vector<32x128xf32>
    %c0_17 = arith.constant 0 : index
    %c0_18 = arith.constant 0 : index
    %46 = vector.load %arg3[%c0_17, %c0_18] : memref<1x128xf32, #tpu.memory_space<vmem>>, vector<1x128xf32>
    %47 = vector.broadcast %46 : vector<1x128xf32> to vector<32x128xf32>
    %48 = arith.addf %45, %47 : vector<32x128xf32>
    %cst_19 = arith.constant 0.000000e+00 : f32
    %49 = vector.broadcast %cst_19 : f32 to vector<32x128xf32>
    %50 = arith.maximumf %48, %49 : vector<32x128xf32>
    %c1_i32_20 = arith.constant 1 : i32
    %51 = tpu.dynamic_rotate %50 by %c1_i32_20 dim 0 : vector<32x128xf32>, i32 -> vector<32x128xf32>
    %cst_21 = arith.constant 0.000000e+00 : f32
    %52 = vector.shape_cast %19 : vector<32x1xi1> to vector<32x1xi1>
    %53 = vector.broadcast %52 : vector<32x1xi1> to vector<32x128xi1>
    %54 = vector.broadcast %cst_21 : f32 to vector<32x128xf32>
    %55 = arith.select %53, %51, %54 : vector<32x128xi1>, vector<32x128xf32>
    %c31_i32_22 = arith.constant 31 : i32
    %56 = tpu.dynamic_rotate %50 by %c31_i32_22 dim 0 : vector<32x128xf32>, i32 -> vector<32x128xf32>
    %cst_23 = arith.constant 0.000000e+00 : f32
    %57 = vector.shape_cast %21 : vector<32x1xi1> to vector<32x1xi1>
    %58 = vector.broadcast %57 : vector<32x1xi1> to vector<32x128xi1>
    %59 = vector.broadcast %cst_23 : f32 to vector<32x128xf32>
    %60 = arith.select %58, %56, %59 : vector<32x128xi1>, vector<32x128xf32>
    %61 = arith.truncf %55 : vector<32x128xf32> to vector<32x128xbf16>
    %62 = arith.truncf %60 : vector<32x128xf32> to vector<32x128xbf16>
    %c0_24 = arith.constant 0 : index
    %c0_25 = arith.constant 0 : index
    %c0_26 = arith.constant 0 : index
    %63 = vector.load %arg4[%c0_24, %c0_25, %c0_26] : memref<3x128x128xbf16, #tpu.memory_space<vmem>>, vector<1x128x128xbf16>
    %64 = vector.shape_cast %63 : vector<1x128x128xbf16> to vector<128x128xbf16>
    %cst_27 = arith.constant dense<0.000000e+00> : vector<32x128xf32>
    %65 = tpu.matmul %61, %64, %cst_27 {dimension_numbers = #tpu.dot_dimension_numbers<[1], [0], [0], [1], [0, 0, 1, 1], [], []>} : vector<32x128xbf16>, vector<128x128xbf16>, vector<32x128xf32> -> vector<32x128xf32>
    %66 = arith.truncf %50 : vector<32x128xf32> to vector<32x128xbf16>
    %c1_28 = arith.constant 1 : index
    %c0_29 = arith.constant 0 : index
    %c0_30 = arith.constant 0 : index
    %67 = vector.load %arg4[%c1_28, %c0_29, %c0_30] : memref<3x128x128xbf16, #tpu.memory_space<vmem>>, vector<1x128x128xbf16>
    %68 = vector.shape_cast %67 : vector<1x128x128xbf16> to vector<128x128xbf16>
    %cst_31 = arith.constant dense<0.000000e+00> : vector<32x128xf32>
    %69 = tpu.matmul %66, %68, %cst_31 {dimension_numbers = #tpu.dot_dimension_numbers<[1], [0], [0], [1], [0, 0, 1, 1], [], []>} : vector<32x128xbf16>, vector<128x128xbf16>, vector<32x128xf32> -> vector<32x128xf32>
    %70 = arith.addf %65, %69 : vector<32x128xf32>
    %c2_32 = arith.constant 2 : index
    %c0_33 = arith.constant 0 : index
    %c0_34 = arith.constant 0 : index
    %71 = vector.load %arg4[%c2_32, %c0_33, %c0_34] : memref<3x128x128xbf16, #tpu.memory_space<vmem>>, vector<1x128x128xbf16>
    %72 = vector.shape_cast %71 : vector<1x128x128xbf16> to vector<128x128xbf16>
    %cst_35 = arith.constant dense<0.000000e+00> : vector<32x128xf32>
    %73 = tpu.matmul %62, %72, %cst_35 {dimension_numbers = #tpu.dot_dimension_numbers<[1], [0], [0], [1], [0, 0, 1, 1], [], []>} : vector<32x128xbf16>, vector<128x128xbf16>, vector<32x128xf32> -> vector<32x128xf32>
    %74 = arith.addf %70, %73 : vector<32x128xf32>
    %c0_36 = arith.constant 0 : index
    %c0_37 = arith.constant 0 : index
    %75 = vector.load %arg5[%c0_36, %c0_37] : memref<1x128xf32, #tpu.memory_space<vmem>>, vector<1x128xf32>
    %76 = vector.broadcast %75 : vector<1x128xf32> to vector<32x128xf32>
    %77 = arith.addf %74, %76 : vector<32x128xf32>
    %78 = arith.addf %77, %0 : vector<32x128xf32>
    %cst_38 = arith.constant 0.000000e+00 : f32
    %79 = vector.broadcast %cst_38 : f32 to vector<32x128xf32>
    %80 = arith.maximumf %78, %79 : vector<32x128xf32>
    %c0_39 = arith.constant 0 : index
    %c0_40 = arith.constant 0 : index
    %81 = vector.load %arg6[%c0_39, %c0_40] : memref<32x128xf32, #tpu.memory_space<vmem>>, vector<32x128xf32>
    tpu.vector_store %arg6[%c0_39, %c0_40], %80 {strides = array<i32>} : memref<32x128xf32, #tpu.memory_space<vmem>>, vector<32x128xf32>,
    return
  }
  func.func @transform_0(%arg0: i32) -> (i32, i32) {
    %c0_i32 = arith.constant 0 : i32
    %c0_i32_0 = arith.constant 0 : i32
    return %arg0, %c0_i32 : i32, i32
  }
  func.func @transform_1(%arg0: i32) -> (i32, i32, i32) {
    %c0_i32 = arith.constant 0 : i32
    %c0_i32_0 = arith.constant 0 : i32
    %c0_i32_1 = arith.constant 0 : i32
    %c0_i32_2 = arith.constant 0 : i32
    return %c0_i32, %c0_i32_0, %c0_i32_1 : i32, i32, i32
  }
  func.func @transform_2(%arg0: i32) -> (i32, i32) {
    %c0_i32 = arith.constant 0 : i32
    %c0_i32_0 = arith.constant 0 : i32
    %c0_i32_1 = arith.constant 0 : i32
    return %c0_i32, %c0_i32_0 : i32, i32
  }
  func.func @transform_3(%arg0: i32) -> (i32, i32, i32) {
    %c0_i32 = arith.constant 0 : i32
    %c0_i32_0 = arith.constant 0 : i32
    %c0_i32_1 = arith.constant 0 : i32
    %c0_i32_2 = arith.constant 0 : i32
    return %c0_i32, %c0_i32_0, %c0_i32_1 : i32, i32, i32
  }
  func.func @transform_4(%arg0: i32) -> (i32, i32) {
    %c0_i32 = arith.constant 0 : i32
    %c0_i32_0 = arith.constant 0 : i32
    %c0_i32_1 = arith.constant 0 : i32
    return %c0_i32, %c0_i32_0 : i32, i32
  }
  func.func @transform_5(%arg0: i32) -> (i32, i32) {
    %c0_i32 = arith.constant 0 : i32
    %c0_i32_0 = arith.constant 0 : i32
    return %arg0, %c0_i32 : i32, i32
  }
}

</mosaic_0001>

<bundles_post_ra>
// kernel: basic_block_forward.1
= control target key start
LH: loop header
LB: loop body
LE: loop exit
PB: predicated region body
PF: predicated region fallthrough
CT: control target
= control target key end

     0   :  { %v25_v6 = vlaneseq  ;;  %vm1263_vm2 = vmmov 1   ;;  %s1574_s1 = inlined_call_operand.vmem [shape: bf16[3,128,128], index: 1, kind: input, shape index: {}]   ;;  %s1575_s0 = inlined_call_operand.vmem [shape: f32[32,128], index: 0, kind: input, shape index: {}]   ;;  %s1576_s3 = inlined_call_operand.vmem [shape: bf16[3,128,128], index: 3, kind: input, shape index: {}]   ;;  %s1577_s2 = inlined_call_operand.vmem [shape: f32[1,128], index: 2, kind: input, shape index: {}]   ;;  %s1578_s4 = inlined_call_operand.vmem [shape: f32[1,128], index: 4, kind: input, shape index: {}]   ;;  %s1579_s5 = inlined_call_operand.vmem [shape: f32[32,128], index: 5, kind: output, shape index: {}]  }
   0x1   :  { %v1215_v0 = vld [vmem:[%s1574_s1 + $0x78] sm:$0xff]   ;;  %v1217_v2 = vld [vmem:[%s1574_s1 + $0x70] sm:$0xff]   ;;  %v1219_v4 = vld [vmem:[%s1574_s1 + $0x68] sm:$0xff]  }
   0x2   :  { %v1216_v1 = vld [vmem:[%s1574_s1 + $0x38] sm:$0xff]   ;;  %1094 = vmatprep.subr.bf16.mxu0 %v1215_v0  ;;  %v1218_v3 = vld [vmem:[%s1574_s1 + $0x30] sm:$0xff]   ;;  %v1220_v5 = vld [vmem:[%s1574_s1 + $0x28] sm:$0xff]   ;;  %v1318_v9 = vshrl.u32 %v25_v6, 7 }
   0x3   :  { %1114 = vmatprep.subr.bf16.mxu1 %v1216_v1  ;;  %1095 = vmatpush3.bf16.msra.mxu0 %v1215_v0  ;;  %v1221_v7 = vld [vmem:[%s1574_s1 + $0x60] sm:$0xff]   ;;  %v1223_v10 = vld [vmem:[%s1574_s1 + $0x58] sm:$0xff]   ;;  %v1225_v13 = vld [vmem:[%s1574_s1 + $0x50] sm:$0xff]  }
   0x4   :  { %1115 = vmatpush3.bf16.msra.mxu1 %v1216_v1  ;;  %1096 = vmatprep.subr.bf16.mxu0 %v1217_v2  ;;  %v1222_v8 = vld [vmem:[%s1574_s1 + $0x20] sm:$0xff]   ;;  %v1224_v11 = vld [vmem:[%s1574_s1 + $0x18] sm:$0xff]   ;;  %v34_v12 = vand.u32 15, %v1318_v9  ;;  %v1338_v15 = vld [vmem:[%s1575_s0 + $0x8] sm:$0xff]  ;;  %vm90_vm1 = vcmp.lt.s32.totalorder %v1318_v9, 1  ;;  %v28_v25 = vadd.s32 16, %v1318_v9 }
   0x5   :  { %1116 = vmatprep.subr.bf16.mxu1 %v1218_v3  ;;  %v1333_v14 = vld [vmem:[%s1575_s0] sm:$0xff]  ;;  %v1343_v16 = vld [vmem:[%s1575_s0 + $0x18] sm:$0xff]  ;;  %v1226_v17 = vld [vmem:[%s1574_s1 + $0x10] sm:$0xff]   ;;  %v87_v22 = vrot.slane %v1338_v15, 7  ;;  %v27_v32 = vadd.s32 8, %v1318_v9  ;;  %v108_v37 = vrot.slane %v1338_v15, 1 }
   0x6   :  { %v148_v18 = vpack.c.bf16 %v1338_v15, %v1333_v14  ;;  %vm1350_vm0 = vcmp.ge.s32.totalorder %v34_v12, 1  ;;  %v86_v20 = vrot.slane %v1333_v14, 7  ;;  %v1227_v21 = vld [vmem:[%s1574_s1 + $0x48] sm:$0xff]   ;;  %v89_v23 = vrot.slane %v1343_v16, 7  ;;  %v1379_v30 = vld [vmem:[%s1575_s0 + $0x10] sm:$0xff]  ;;  %v1229_v31 = vld [vmem:[%s1574_s1 + $0x40] sm:$0xff]  }
   0x7   :  { %1097 = vmatpush3.bf16.msra.mxu0 %v1217_v2  ;;  %v1228_v24 = vld [vmem:[%s1574_s1 + $0x8] sm:$0xff]   ;;  %vm1372_vm3 = vmpackc.low %vm1263_vm2, %vm1350_vm0  ;;  %v1230_v33 = vld [vmem:[%s1574_s1] sm:$0xff]   ;;  %v48_v34 = vand.u32 15, %v28_v25  ;;  %v107_v35 = vrot.slane %v1333_v14, 1  ;;  %v88_v36 = vrot.slane %v1379_v30, 7  ;;  %v109_v38 = vrot.slane %v1379_v30, 1 }
   0x8   :  { %1117 = vmatpush3.bf16.msra.mxu1 %v1218_v3  ;;  %1098 = vmatprep.subr.bf16.mxu0 %v1219_v4  ;;  %v93_v26 = vsel %vm90_vm1, %v86_v20, %v87_v22  ;;  %v94_v27 = vsel %vm90_vm1, %v89_v23, %v86_v20  ;;  %v41_v39 = vand.u32 15, %v27_v32  ;;  %vm111_vm4 = vcmp.lt.s32.totalorder %v1318_v9, 7  ;;  %v1231_v42 = vld [vmem:[%s1574_s1 + $0xb8] sm:$0xff]   ;;  %v1232_v48 = vld [vmem:[%s1574_s1 + $0xb0] sm:$0xff]   ;;  %v1233_v51 = vld [vmem:[%s1574_s1 + $0xa8] sm:$0xff]  }
   0x9   :  { %1118 = vmatprep.subr.bf16.mxu1 %v1220_v5  ;;  %1110 = vmatprep.mubr.bf16.mxu0 %v148_v18  ;;  %v929_v29 = vpack.c.bf16 %v93_v26, %v94_v27  ;;  %v91_v40 = vsel %vm90_vm1, %v88_v36, %v89_v23  ;;  %v92_v41 = vsel %vm90_vm1, %v87_v22, %v88_v36  ;;  %vm80_vm5 = vcmp.ge.s32.totalorder %v48_v34, 1  ;;  %v1234_v52 = vld [vmem:[%s1574_s1 + $0xa0] sm:$0xff]   ;;  %v1235_v53 = vld [vmem:[%s1574_s1 + $0x98] sm:$0xff]   ;;  %v1236_v54 = vld [vmem:[%s1574_s1 + $0x90] sm:$0xff]  }
   0xa   :  { %v113_v43 = vsel %vm111_vm4, %v108_v37, %v109_v38  ;;  %v114_v44 = vsel %vm111_vm4, %v107_v35, %v108_v37  ;;  %v149_v45 = vpack.c.bf16 %v1343_v16, %v1379_v30  ;;  %vm83_vm6 = vcmp.le.s32.totalorder %v41_v39, 14  ;;  %vm1409_vm7 = vmpackc.low %vm1263_vm2, %vm80_vm5  ;;  %v1237_v55 = vld [vmem:[%s1574_s1 + $0x88] sm:$0xff]   ;;  %v1238_v58 = vld [vmem:[%s1574_s1 + $0x80] sm:$0xff]  }
   0xb   :  { %1099 = vmatpush3.bf16.msra.mxu0 %v1219_v4  ;;  %1130 = vmatprep.mubr.msk.bf16.mxu1 %vm1372_vm3, %v929_v29  ;;  %v932_v46 = vpack.c.bf16 %v91_v40, %v92_v41  ;;  %v959_v49 = vpack.c.bf16 %v113_v43, %v114_v44  ;;  %vm1417_vm8 = vmpackc.low %vm83_vm6, %vm1263_vm2  ;;  %v29_v56 = vadd.s32 24, %v1318_v9  ;;  %v110_v57 = vrot.slane %v1343_v16, 1  ;;  %v1239_v0 = vld [vmem:[%s1576_s3 + $0x78] sm:$0xff]   ;;  %v1240_v1 = vld [vmem:[%s1576_s3 + $0x70] sm:$0xff]  }
   0xc   :  { %1119 = vmatpush3.bf16.msra.mxu1 %v1220_v5  ;;  %1100 = vmatprep.subr.bf16.mxu0 %v1221_v7  ;;  %v1241_v2 = vld [vmem:[%s1576_s3 + $0x38] sm:$0xff]   ;;  %v1242_v3 = vld [vmem:[%s1576_s3 + $0x68] sm:$0xff]   ;;  %v1243_v4 = vld [vmem:[%s1576_s3 + $0x30] sm:$0xff]  }
   0xd   :  { %1120 = vmatprep.subr.bf16.mxu1 %v1222_v8  ;;  %v55_v59 = vand.u32 15, %v29_v56  ;;  %v112_v60 = vsel %vm111_vm4, %v109_v38, %v110_v57  ;;  %v115_v61 = vsel %vm111_vm4, %v110_v57, %v107_v35  ;;  %v1245_v5 = vld [vmem:[%s1576_s3 + $0x28] sm:$0xff]   ;;  %v1244_v6 = vld [vmem:[%s1576_s3 + $0x60] sm:$0xff]   ;;  %v1255_v20 = vld [vmem:[%s1576_s3 + $0xb8] sm:$0xff]  }
   0xe   :  { %v962_v62 = vpack.c.bf16 %v115_v61, %v112_v60  ;;  %v1250_v12 = vld [vmem:[%s1576_s3 + $0x48] sm:$0xff]   ;;  %v1254_v19 = vld [vmem:[%s1576_s3] sm:$0xff]   ;;  %v1259_v28 = vld [vmem:[%s1576_s3 + $0x98] sm:$0xff]  }
   0xf   :  { %1101 = vmatpush3.bf16.msra.mxu0 %v1221_v7  ;;  %vm85_vm9 = vcmp.le.s32.totalorder %v55_v59, 14  ;;  %v1247_v7 = vld [vmem:[%s1576_s3 + $0x20] sm:$0xff]   ;;  %v1253_v18 = vld [vmem:[%s1576_s3 + $0x8] sm:$0xff]   ;;  %v1260_v47 = vld [vmem:[%s1576_s3 + $0x90] sm:$0xff]  }
  0x10   :  { %1121 = vmatpush3.bf16.msra.mxu1 %v1222_v8  ;;  %1102 = vmatprep.subr.bf16.mxu0 %v1223_v10  ;;  %vm1450_vm10 = vmpackc.low %vm85_vm9, %vm1263_vm2  ;;  %v1246_v8 = vld [vmem:[%s1576_s3 + $0x58] sm:$0xff]   ;;  %v964_v34 = vld [vmem:[%s1577_s2] ss:$0 sm:$0xff] }
  0x11   :  { %1122 = vmatprep.subr.bf16.mxu1 %v1224_v11  ;;  %v1261_v50 = vld [vmem:[%s1576_s3 + $0x88] sm:$0xff]  }
  0x13   :  { %1103 = vmatpush3.bf16.msra.mxu0 %v1223_v10  ;;  %v1248_v10 = vld [vmem:[%s1576_s3 + $0x50] sm:$0xff]  }
  0x14   :  { %1123 = vmatpush3.bf16.msra.mxu1 %v1224_v11  ;;  %1104 = vmatprep.subr.bf16.mxu0 %v1225_v13  ;;  %v1249_v11 = vld [vmem:[%s1576_s3 + $0x18] sm:$0xff]  }
  0x15   :  { %1124 = vmatprep.subr.bf16.mxu1 %v1226_v17 }
  0x17   :  { %1105 = vmatpush3.bf16.msra.mxu0 %v1225_v13  ;;  %v1251_v13 = vld [vmem:[%s1576_s3 + $0x10] sm:$0xff]  }
  0x18   :  { %1125 = vmatpush3.bf16.msra.mxu1 %v1226_v17  ;;  %1106 = vmatprep.subr.bf16.mxu0 %v1227_v21  ;;  %v1252_v17 = vld [vmem:[%s1576_s3 + $0x40] sm:$0xff]  }
  0x19   :  { %1126 = vmatprep.subr.bf16.mxu1 %v1228_v24 }
  0x1b   :  { %1107 = vmatpush3.bf16.msra.mxu0 %v1227_v21 }
  0x1c   :  { %1127 = vmatpush3.bf16.msra.mxu1 %v1228_v24  ;;  %1108 = vmatprep.subr.bf16.mxu0 %v1229_v31 }
  0x1d   :  { %1128 = vmatprep.subr.bf16.mxu1 %v1230_v33 }
  0x1f   :  { %1109 = vmatpush3.bf16.msra.mxu0 %v1229_v31 }
  0x20   :  { %1129 = vmatpush3.bf16.msra.mxu1 %v1230_v33  ;;  %1134 = vmatprep.subr.bf16.mxu0 %v1231_v42 }
  0x21   :  { %1154 = vmatprep.subr.bf16.mxu1 %v1239_v0 }
  0x22   :  { %1111 = vmatmul.mubr.bf16.vlgmr.msra.gmra.mxu0 %v149_v45 }
  0x23   :  { %1131 = vmatmul.mubr.msk.bf16.vlgmr.msra.gmra.mxu1 %vm1409_vm7, %v932_v46  ;;  %1135 = vmatpush3.bf16.msra.mxu0 %v1231_v42 }
  0x24   :  { %1136 = vmatprep.subr.bf16.mxu0 %v1232_v48  ;;  %1150 = vmatprep.mubr.msk.bf16.mxu0 %vm1417_vm8, %v959_v49 }
  0x25   :  { %1155 = vmatpush3.bf16.msra.mxu1 %v1239_v0 }
  0x26   :  { %1156 = vmatprep.subr.bf16.mxu1 %v1240_v1 }
  0x27   :  { %1137 = vmatpush3.bf16.msra.mxu0 %v1232_v48 }
  0x28   :  { %1138 = vmatprep.subr.bf16.mxu0 %v1233_v51 }
  0x29   :  { %1157 = vmatpush3.bf16.msra.mxu1 %v1240_v1 }
  0x2a   :  { %1158 = vmatprep.subr.bf16.mxu1 %v1242_v3 }
  0x2b   :  { %1139 = vmatpush3.bf16.msra.mxu0 %v1233_v51 }
  0x2c   :  { %1140 = vmatprep.subr.bf16.mxu0 %v1234_v52 }
  0x2d   :  { %1159 = vmatpush3.bf16.msra.mxu1 %v1242_v3 }
  0x2e   :  { %1160 = vmatprep.subr.bf16.mxu1 %v1244_v6 }
  0x2f   :  { %1141 = vmatpush3.bf16.msra.mxu0 %v1234_v52 }
  0x30   :  { %1142 = vmatprep.subr.bf16.mxu0 %v1235_v53 }
  0x31   :  { %1161 = vmatpush3.bf16.msra.mxu1 %v1244_v6  ;;  %v1256_v6 = vld [vmem:[%s1576_s3 + $0xb0] sm:$0xff]  }
  0x32   :  { %1162 = vmatprep.subr.bf16.mxu1 %v1246_v8 }
  0x33   :  { %1143 = vmatpush3.bf16.msra.mxu0 %v1235_v53 }
  0x34   :  { %1144 = vmatprep.subr.bf16.mxu0 %v1236_v54 }
  0x35   :  { %1163 = vmatpush3.bf16.msra.mxu1 %v1246_v8 }
  0x36   :  { %1164 = vmatprep.subr.bf16.mxu1 %v1248_v10 }
  0x37   :  { %1145 = vmatpush3.bf16.msra.mxu0 %v1236_v54 }
  0x38   :  { %1146 = vmatprep.subr.bf16.mxu0 %v1237_v55 }
  0x39   :  { %1165 = vmatpush3.bf16.msra.mxu1 %v1248_v10 }
  0x3a   :  { %1166 = vmatprep.subr.bf16.mxu1 %v1250_v12 }
  0x3b   :  { %1147 = vmatpush3.bf16.msra.mxu0 %v1237_v55 }
  0x3c   :  { %1148 = vmatprep.subr.bf16.mxu0 %v1238_v58 }
  0x3d   :  { %1167 = vmatpush3.bf16.msra.mxu1 %v1250_v12  ;;  %v1258_v12 = vld [vmem:[%s1576_s3 + $0xa0] sm:$0xff]  }
  0x3e   :  { %1168 = vmatprep.subr.bf16.mxu1 %v1252_v17 }
  0x3f   :  { %1149 = vmatpush3.bf16.msra.mxu0 %v1238_v58 }
  0x40   :  { %1174 = vmatprep.subr.bf16.mxu0 %v1241_v2 }
  0x41   :  { %1169 = vmatpush3.bf16.msra.mxu1 %v1252_v17 }
  0x42   :  { %1151 = vmatmul.mubr.msk.bf16.vlgmr.msra.gmra.mxu0 %vm1450_vm10, %v962_v62  ;;  %1194 = vmatprep.subr.bf16.mxu1 %v1255_v20 }
  0x43   :  { %1175 = vmatpush3.bf16.msra.mxu0 %v1241_v2 }
  0x44   :  { %1176 = vmatprep.subr.bf16.mxu0 %v1243_v4 }
  0x47   :  { %1177 = vmatpush3.bf16.msra.mxu0 %v1243_v4 }
  0x48   :  { %1178 = vmatprep.subr.bf16.mxu0 %v1245_v5 }
  0x4b   :  { %1179 = vmatpush3.bf16.msra.mxu0 %v1245_v5 }
  0x4c   :  { %1180 = vmatprep.subr.bf16.mxu0 %v1247_v7 }
  0x4f   :  { %1181 = vmatpush3.bf16.msra.mxu0 %v1247_v7 }
  0x50   :  { %1182 = vmatprep.subr.bf16.mxu0 %v1249_v11 }
  0x53   :  { %1183 = vmatpush3.bf16.msra.mxu0 %v1249_v11  ;;  %v1257_v11 = vld [vmem:[%s1576_s3 + $0xa8] sm:$0xff]  }
  0x54   :  { %1184 = vmatprep.subr.bf16.mxu0 %v1251_v13 }
  0x57   :  { %1185 = vmatpush3.bf16.msra.mxu0 %v1251_v13  ;;  %v1262_v13 = vld [vmem:[%s1576_s3 + $0x80] sm:$0xff]  }
  0x58   :  { %1186 = vmatprep.subr.bf16.mxu0 %v1253_v18 }
  0x5b   :  { %1187 = vmatpush3.bf16.msra.mxu0 %v1253_v18 }
  0x5c   :  { %1188 = vmatprep.subr.bf16.mxu0 %v1254_v19 }
  0x5f   :  { %1189 = vmatpush3.bf16.msra.mxu0 %v1254_v19 }
  0xe2   :  { %v1112_v21 = vpop.f32.mrf.mxu0 }
  0xe3   :  { %v1132_v23 = vpop.f32.mrf.mxu1 }
  0xe4   :  { %v249_v22 = vpop.f32.mrf.mxu0  ;;  %v355_v27 = vadd.f32 %v1132_v23, %v1112_v21 }
  0xe5   :  { %v346_v25 = vpop.f32.mrf.mxu1 }
  0xe6   :  { %v1113_v24 = vpop.f32.mrf.mxu0  ;;  %v347_v32 = vadd.f32 %v346_v25, %v249_v22 }
  0xe7   :  { %v1133_v29 = vpop.f32.mrf.mxu1 }
  0xe8   :  { %v252_v26 = vpop.f32.mrf.mxu0  ;;  %v358_v36 = vadd.f32 %v1133_v29, %v1113_v24 }
  0xe9   :  { %v349_v37 = vpop.f32.mrf.mxu1 }
  0xea   :  { %v350_v43 = vadd.f32 %v349_v37, %v252_v26 }
 0x102   :  { %v1152_v31 = vpop.f32.mrf.mxu0 }
 0x103   :  { %v477_v33 = vadd.f32 %v1152_v31, %v355_v27 }
 0x104   :  { %v460_v35 = vpop.f32.mrf.mxu0 }
 0x105   :  { %v475_v38 = vadd.f32 %v460_v35, %v347_v32  ;;  %v488_v40 = vadd.f32 %v964_v34, %v477_v33  ;;  %v1033_v32 = vld [vmem:[%s1578_s4] ss:$0 sm:$0xff] }
 0x106   :  { %v1153_v39 = vpop.f32.mrf.mxu0 }
 0x107   :  { %v486_v41 = vadd.f32 %v964_v34, %v475_v38  ;;  %v478_v42 = vadd.f32 %v1153_v39, %v358_v36  ;;  %v492_v48 = vmax.f32 %v488_v40, 0.0 }
 0x108   :  { %v463_v44 = vpop.f32.mrf.mxu0 }
 0x109   :  { %v489_v45 = vadd.f32 %v964_v34, %v478_v42  ;;  %v476_v46 = vadd.f32 %v463_v44, %v350_v43  ;;  %v490_v49 = vmax.f32 %v486_v41, 0.0  ;;  %v496_v55 = vrot.slane %v492_v48, 7 }
 0x10a   :  { %v508_v56 = vrot.slane %v492_v48, 1 }
 0x10b   :  { %v493_v51 = vmax.f32 %v489_v45, 0.0  ;;  %v487_v52 = vadd.f32 %v964_v34, %v476_v46  ;;  %v494_v57 = vrot.slane %v490_v49, 7  ;;  %v506_v58 = vrot.slane %v490_v49, 1 }
 0x10d   :  { %v497_v53 = vrot.slane %v493_v51, 7  ;;  %v491_v54 = vmax.f32 %v487_v52, 0.0  ;;  %v539_v0 = vpack.c.bf16 %v493_v51, %v492_v48  ;;  %v509_v17 = vrot.slane %v493_v51, 1 }
 0x10f   :  { %v495_v59 = vrot.slane %v491_v54, 7  ;;  %v507_v60 = vrot.slane %v491_v54, 1  ;;  %v538_v61 = vpack.c.bf16 %v491_v54, %v490_v49  ;;  %v498_v62 = vsel %vm90_vm1, %v496_v55, %v497_v53 }
 0x110   :  { %v501_v1 = vsel %vm90_vm1, %v497_v53, %v494_v57  ;;  %v510_v18 = vsel %vm111_vm4, %v508_v56, %v509_v17  ;;  %v513_v19 = vsel %vm111_vm4, %v509_v17, %v506_v58 }
 0x111   :  { %v499_v2 = vsel %vm90_vm1, %v495_v59, %v496_v55  ;;  %1170 = vmatprep.mubr.bf16.mxu1 %v538_v61  ;;  %v500_v3 = vsel %vm90_vm1, %v494_v57, %v495_v59  ;;  %v511_v4 = vsel %vm111_vm4, %v507_v60, %v508_v56  ;;  %v512_v5 = vsel %vm111_vm4, %v506_v58, %v507_v60 }
 0x112   :  { %1171 = vmatmul.mubr.bf16.vlgmr.msra.gmra.mxu1 %v539_v0  ;;  %v998_v7 = vpack.c.bf16 %v500_v3, %v501_v1  ;;  %v1028_v8 = vpack.c.bf16 %v511_v4, %v512_v5  ;;  %v1001_v10 = vpack.c.bf16 %v498_v62, %v499_v2 }
 0x113   :  { %1195 = vmatpush3.bf16.msra.mxu1 %v1255_v20  ;;  %v1031_v20 = vpack.c.bf16 %v513_v19, %v510_v18 }
 0x114   :  { %1190 = vmatprep.mubr.msk.bf16.mxu0 %vm1372_vm3, %v998_v7  ;;  %1210 = vmatprep.mubr.msk.bf16.mxu1 %vm1417_vm8, %v1028_v8 }
 0x115   :  { %1191 = vmatmul.mubr.msk.bf16.vlgmr.msra.gmra.mxu0 %vm1409_vm7, %v1001_v10  ;;  %1196 = vmatprep.subr.bf16.mxu1 %v1256_v6 }
 0x117   :  { %1197 = vmatpush3.bf16.msra.mxu1 %v1256_v6 }
 0x118   :  { %1198 = vmatprep.subr.bf16.mxu1 %v1257_v11 }
 0x11b   :  { %1199 = vmatpush3.bf16.msra.mxu1 %v1257_v11 }
 0x11c   :  { %1200 = vmatprep.subr.bf16.mxu1 %v1258_v12 }
 0x11f   :  { %1201 = vmatpush3.bf16.msra.mxu1 %v1258_v12 }
 0x120   :  { %1202 = vmatprep.subr.bf16.mxu1 %v1259_v28 }
 0x123   :  { %1203 = vmatpush3.bf16.msra.mxu1 %v1259_v28 }
 0x124   :  { %1204 = vmatprep.subr.bf16.mxu1 %v1260_v47 }
 0x127   :  { %1205 = vmatpush3.bf16.msra.mxu1 %v1260_v47 }
 0x128   :  { %1206 = vmatprep.subr.bf16.mxu1 %v1261_v50 }
 0x12b   :  { %1207 = vmatpush3.bf16.msra.mxu1 %v1261_v50 }
 0x12c   :  { %1208 = vmatprep.subr.bf16.mxu1 %v1262_v13 }
 0x12f   :  { %1209 = vmatpush3.bf16.msra.mxu1 %v1262_v13 }
 0x132   :  { %1211 = vmatmul.mubr.msk.bf16.vlgmr.msra.gmra.mxu1 %vm1450_vm10, %v1031_v20 }
 0x1d2   :  { %v1172_v21 = vpop.f32.mrf.mxu1 }
 0x1d4   :  { %v639_v22 = vpop.f32.mrf.mxu1 }
 0x1d5   :  { %v1192_v23 = vpop.f32.mrf.mxu0 }
 0x1d6   :  { %v1173_v24 = vpop.f32.mrf.mxu1  ;;  %v745_v29 = vadd.f32 %v1192_v23, %v1172_v21 }
 0x1d7   :  { %v736_v25 = vpop.f32.mrf.mxu0 }
 0x1d8   :  { %v642_v26 = vpop.f32.mrf.mxu1  ;;  %v737_v9 = vadd.f32 %v736_v25, %v639_v22 }
 0x1d9   :  { %v1193_v27 = vpop.f32.mrf.mxu0 }
 0x1da   :  { %v748_v36 = vadd.f32 %v1193_v27, %v1173_v24 }
 0x1db   :  { %v739_v34 = vpop.f32.mrf.mxu0 }
 0x1dc   :  { %v740_v39 = vadd.f32 %v739_v34, %v642_v26 }
 0x1f2   :  { %v1212_v31 = vpop.f32.mrf.mxu1 }
 0x1f3   :  { %v867_v33 = vadd.f32 %v1212_v31, %v745_v29 }
 0x1f4   :  { %v850_v35 = vpop.f32.mrf.mxu1 }
 0x1f5   :  { %v878_v63 = vadd.f32 %v1033_v32, %v867_v33  ;;  %v865_v37 = vadd.f32 %v850_v35, %v737_v9 }
 0x1f6   :  { %v1213_v38 = vpop.f32.mrf.mxu1 }
 0x1f7   :  { %v882_v40 = vadd.f32 %v878_v63, %v1379_v30  ;;  %v876_v41 = vadd.f32 %v1033_v32, %v865_v37  ;;  %v868_v42 = vadd.f32 %v1213_v38, %v748_v36 }
 0x1f8   :  { %v853_v43 = vpop.f32.mrf.mxu1 }
 0x1f9   :  { %v886_v44 = vmax.f32 %v882_v40, 0.0  ;;  %v880_v45 = vadd.f32 %v876_v41, %v1333_v14  ;;  %v879_v46 = vadd.f32 %v1033_v32, %v868_v42  ;;  %v866_v48 = vadd.f32 %v853_v43, %v740_v39 }
 0x1fb   :  { %890 = vst [vmem:[%s1579_s5 + $0x10] sm:$0xff] %v886_v44  ;;  %v884_v49 = vmax.f32 %v880_v45, 0.0  ;;  %v883_v51 = vadd.f32 %v879_v46, %v1343_v16  ;;  %v877_v52 = vadd.f32 %v1033_v32, %v866_v48 }
 0x1fd   :  { %888 = vst [vmem:[%s1579_s5] sm:$0xff] %v884_v49  ;;  %v887_v30 = vmax.f32 %v883_v51, 0.0  ;;  %v881_v53 = vadd.f32 %v877_v52, %v1338_v15 }
 0x1ff   :  { %891 = vst [vmem:[%s1579_s5 + $0x18] sm:$0xff] %v887_v30  ;;  %v885_v14 = vmax.f32 %v881_v53, 0.0 }
 0x201   :  { %889 = vst [vmem:[%s1579_s5 + $0x8] sm:$0xff] %v885_v14 }

</bundles_post_ra>
